<compile_context>
chip_gen: v5e
topology: v5e:2x2
jax: 0.10.0
libtpu: 0.0.40
codegen_flags: <defaults>
</compile_context>

<pallas_src>
import jax
import jax.numpy as jnp
from jax.experimental import pallas as pl
from jax.experimental.pallas import tpu as pltpu


def smooth_ce_kernel(pred_ref, target_ref, out_ref):
    # pred_ref:   (tm, C)  caller's storage dtype (f32 / bf16 / ...)
    # target_ref: (tm, 1)  float32
    # out_ref:    (tm, 1)  float32
    pred = pred_ref[...].astype(jnp.float32)
    t = target_ref[...]

    # numerically-stable log-sum-exp over the class (lane) axis
    m = jnp.max(pred, axis=-1, keepdims=True)                          # (tm, 1)
    lse = jnp.log(jnp.sum(jnp.exp(pred - m), axis=-1, keepdims=True))  # (tm, 1)

    # only classes 0 and 1 of true_dist are nonzero, so the weighted sum
    # collapses to two log-probabilities; slice narrowly so the full (tm, C)
    # shifted tensor never has to stay live.
    lp01 = pred[:, 0:2] - m - lse                                      # (tm, 2)
    lp0 = lp01[:, 0:1]
    lp1 = lp01[:, 1:2]

    out_ref[...] = -(t * lp0 + (1.0 - t) * lp1)


def _pick_row_tile(n_rows, n_classes, pred_bytes,
                   vmem_budget_bytes=20 * 1024 * 1024, tm_cap=2048):
    """Largest row tile whose double-buffered pred block + f32 temporaries fit
    comfortably inside the scoped-VMEM budget on every TPU generation."""
    # per row: 2 pipeline buffers of pred (storage dtype) + ~2 f32 temporaries
    per_row = n_classes * (2 * pred_bytes + 8)
    tm = vmem_budget_bytes // max(per_row, 1)
    tm = min(tm, tm_cap, max(n_rows, 8))
    tm = max(8, (tm // 8) * 8)  # keep a sublane multiple
    return int(tm)


def smooth_ce(pred, target, *, tm=None):
    """pred: (N, C) float, target: (N,) float. Returns (N,) float32."""
    N, C = pred.shape
    assert C >= 2, "SmoothCE requires C >= 2 (uses class columns 0 and 1)"

    pred_bytes = jnp.dtype(pred.dtype).itemsize
    if tm is None:
        tm = _pick_row_tile(N, C, pred_bytes)

    # pad rows so the grid covers N exactly; padded rows are sliced off below
    n_pad = (-N) % tm
    N_pad = N + n_pad
    if n_pad:
        pred = jnp.pad(pred, ((0, n_pad), (0, 0)))
        target = jnp.pad(target, (0, n_pad))

    # keep the soft label in f32 (only 4*N bytes of traffic; avoids truncating
    # it when pred is stored in bf16/fp8)
    t2 = target.reshape(N_pad, 1).astype(jnp.float32)

    cost = pl.CostEstimate(
        flops=3 * N_pad * C,
        transcendentals=N_pad * C,
        bytes_accessed=N_pad * C * pred_bytes + 8 * N_pad,
    )

    out = pl.pallas_call(
        smooth_ce_kernel,
        out_shape=jax.ShapeDtypeStruct((N_pad, 1), jnp.float32),
        grid=(N_pad // tm,),
        in_specs=[
            pl.BlockSpec((tm, C), lambda i: (i, 0)),
            pl.BlockSpec((tm, 1), lambda i: (i, 0)),
        ],
        out_specs=pl.BlockSpec((tm, 1), lambda i: (i, 0)),
        compiler_params=pltpu.CompilerParams(
            dimension_semantics=("parallel",),
            vmem_limit_bytes=32 * 1024 * 1024,
        ),
        cost_estimate=cost,
    )(pred, t2)
    return out[:N, 0]


def smooth_ce_ref(pred, target):
    """Pure-JAX reference mirroring the PyTorch module exactly."""
    logp = jax.nn.log_softmax(pred.astype(jnp.float32), axis=-1)
    true_dist = jnp.zeros_like(logp)
    true_dist = true_dist.at[:, 0].set(target)
    true_dist = true_dist.at[:, 1].set(1.0 - target)
    return jnp.sum(-true_dist * logp, axis=-1)


if __name__ == "__main__":
    key = jax.random.PRNGKey(0)
    k_pred, k_tgt, k_pred2, k_tgt2 = jax.random.split(key, 4)

    # small shapes consistent with the module (C >= 2 required)
    N, C = 8, 32
    pred = jax.random.normal(k_pred, (N, C), dtype=jnp.float32)
    target = jax.random.uniform(k_tgt, (N,), dtype=jnp.float32)

    out = jax.block_until_ready(smooth_ce(pred, target))
    ref = smooth_ce_ref(pred, target)
    assert out.shape == (N,)
    assert jnp.allclose(out, ref, atol=1e-5, rtol=1e-5), (out, ref)

    # non-multiple row count exercises the padding path
    N2, C2 = 13, 32
    pred2 = jax.random.normal(k_pred2, (N2, C2), dtype=jnp.float32)
    target2 = jax.random.uniform(k_tgt2, (N2,), dtype=jnp.float32)
    out2 = jax.block_until_ready(smooth_ce(pred2, target2))
    ref2 = smooth_ce_ref(pred2, target2)
    assert out2.shape == (N2,)
    assert jnp.allclose(out2, ref2, atol=1e-5, rtol=1e-5), (out2, ref2)

    print("KERNEL_OK")
</pallas_src>

<mosaic_0001>
module attributes {stable_mosaic.version = 11 : i64} {
  func.func @smooth_ce_kernel(%arg0: i32, %arg1: memref<8x32xf32, #tpu.memory_space<vmem>>, %arg2: memref<8x1xf32, #tpu.memory_space<vmem>>, %arg3: memref<8x1xf32, #tpu.memory_space<vmem>>) attributes {dimension_semantics = [#tpu.dimension_semantics<parallel>], iteration_bounds = array<i64: 1>, scalar_prefetch = 0 : i64, scratch_operands = 0 : i64, tpu.core_type = #tpu.core_type<tc>, window_params = [{transform_indices = @transform_0, window_bounds = array<i64: 8, 32>}, {transform_indices = @transform_1, window_bounds = array<i64: 8, 1>}, {transform_indices = @transform_2, window_bounds = array<i64: 8, 1>}]} {
    %c0 = arith.constant 0 : index
    %c0_0 = arith.constant 0 : index
    %0 = vector.load %arg1[%c0, %c0_0] : memref<8x32xf32, #tpu.memory_space<vmem>>, vector<8x32xf32>
    %c0_1 = arith.constant 0 : index
    %c0_2 = arith.constant 0 : index
    %1 = vector.load %arg2[%c0_1, %c0_2] : memref<8x1xf32, #tpu.memory_space<vmem>>, vector<8x1xf32>
    %cst = arith.constant dense<0xFF800000> : vector<8xf32>
    %2 = vector.multi_reduction <maximumf>, %0, %cst [1] : vector<8x32xf32> to vector<8xf32>
    %3 = vector.shape_cast %2 : vector<8xf32> to vector<8x1xf32>
    %4 = vector.broadcast %3 : vector<8x1xf32> to vector<8x32xf32>
    %5 = arith.subf %0, %4 : vector<8x32xf32>
    %6 = math.exp %5 : vector<8x32xf32>
    %cst_3 = arith.constant dense<0.000000e+00> : vector<8xf32>
    %7 = vector.multi_reduction <add>, %6, %cst_3 [1] : vector<8x32xf32> to vector<8xf32>
    %8 = vector.shape_cast %7 : vector<8xf32> to vector<8x1xf32>
    %9 = math.log %8 : vector<8x1xf32>
    %10 = vector.extract_strided_slice %0 {offsets = [0, 0], sizes = [8, 2], strides = [1, 1]} : vector<8x32xf32> to vector<8x2xf32>
    %11 = vector.broadcast %3 : vector<8x1xf32> to vector<8x2xf32>
    %12 = arith.subf %10, %11 : vector<8x2xf32>
    %13 = vector.broadcast %9 : vector<8x1xf32> to vector<8x2xf32>
    %14 = arith.subf %12, %13 : vector<8x2xf32>
    %15 = vector.extract_strided_slice %14 {offsets = [0, 0], sizes = [8, 1], strides = [1, 1]} : vector<8x2xf32> to vector<8x1xf32>
    %16 = vector.extract_strided_slice %14 {offsets = [0, 1], sizes = [8, 1], strides = [1, 1]} : vector<8x2xf32> to vector<8x1xf32>
    %17 = arith.mulf %1, %15 : vector<8x1xf32>
    %cst_4 = arith.constant 1.000000e+00 : f32
    %18 = vector.broadcast %cst_4 : f32 to vector<8x1xf32>
    %19 = arith.subf %18, %1 : vector<8x1xf32>
    %20 = arith.mulf %19, %16 : vector<8x1xf32>
    %21 = arith.addf %17, %20 : vector<8x1xf32>
    %cst_5 = arith.constant 0.000000e+00 : f32
    %22 = vector.broadcast %cst_5 : f32 to vector<8x1xf32>
    %23 = arith.subf %22, %21 : vector<8x1xf32>
    %c0_6 = arith.constant 0 : index
    %c0_7 = arith.constant 0 : index
    %24 = vector.load %arg3[%c0_6, %c0_7] : memref<8x1xf32, #tpu.memory_space<vmem>>, vector<8x1xf32>
    tpu.vector_store %arg3[%c0_6, %c0_7], %23 {strides = array<i32>} : memref<8x1xf32, #tpu.memory_space<vmem>>, vector<8x1xf32>,
    return
  }
  func.func @transform_0(%arg0: i32) -> (i32, i32) {
    %c0_i32 = arith.constant 0 : i32
    %c0_i32_0 = arith.constant 0 : i32
    return %arg0, %c0_i32 : i32, i32
  }
  func.func @transform_1(%arg0: i32) -> (i32, i32) {
    %c0_i32 = arith.constant 0 : i32
    %c0_i32_0 = arith.constant 0 : i32
    return %arg0, %c0_i32 : i32, i32
  }
  func.func @transform_2(%arg0: i32) -> (i32, i32) {
    %c0_i32 = arith.constant 0 : i32
    %c0_i32_0 = arith.constant 0 : i32
    return %arg0, %c0_i32 : i32, i32
  }
}

</mosaic_0001>

<bundles_post_ra>
// kernel: tpu_custom_call.1
= control target key start
LH: loop header
LB: loop body
LE: loop exit
PB: predicated region body
PF: predicated region fallthrough
CT: control target
= control target key end

     0   :  { %vm13_vm0 = vcmask 261120   ;;  %s46_s11 = smov 127   ;;  %vm35_vm1 = vcmask 7168   ;;  %s71_s0 = inlined_call_operand.vmem [shape: f32[8,32], index: 0, kind: input, shape index: {}]   ;;  %s72_s1 = inlined_call_operand.vmem [shape: f32[8,1], index: 1, kind: input, shape index: {}]   ;;  %s73_s2 = inlined_call_operand.vmem [shape: f32[8,1], index: 2, kind: output, shape index: {}]  }
   0x1   :  { %v11_v0 = vld [vmem:[%s71_s0] sm:$0xff] }
   0x2   :  { %v14_v1 = vsel %vm13_vm0, %v11_v0, -inf  ;;  %v12_v11 = vld [vmem:[%s72_s1] sm:$0xff] }
   0x3   :  { %15 = vmax.xlane.f32.xlu0 %v14_v1  ;;  %v27_v12 = vsub.f32 1.0, %v12_v11 }
  0x76   :  { %v16_v2 = vpop.xlane.xlu0 %15 }
  0x77   :  { %v17_v3 = vsub.f32 %v11_v0, %v16_v2 }
  0x79   :  { %v18_v4 = vmul.f32 1.442695, %v17_v3 }
  0x7b   :  { %42 = vpow2.f32 %v18_v4 }
  0x81   :  { %v43_v5 = vpop.eup %42 }
  0x82   :  { %v20_v6 = vsel %vm13_vm0, %v43_v5, 0.0 }
  0x83   :  { %21 = vadd.xlane.f32.xlu0 %v20_v6 }
  0xf6   :  { %v22_v7 = vpop.xlane.xlu0 %21 }
  0xf7   :  { %44 = vlog2.f32 %v22_v7 }
  0xfd   :  { %v45_v8 = vpop.eup %44 }
  0xfe   :  { %v24_v9 = vmul.f32 0.6931472, %v45_v8 }
 0x100   :  { %v25_v10 = vsub.f32 %v17_v3, %v24_v9 }
 0x102   :  { %29 = vrot.lane.b32.xlu1 %v25_v10, %s46_s11  ;;  %v26_v14 = vmul.f32 %v25_v10, %v12_v11 }
 0x174   :  { %v30_v13 = vpop.permute.xlu1 %29 }
 0x175   :  { %v32_v15 = vmul.f32 %v30_v13, %v27_v12 }
 0x177   :  { %v33_v16 = vadd.f32 %v32_v15, %v26_v14 }
 0x179   :  { %v34_v17 = vsub.f32 0.0, %v33_v16 }
 0x17b   :  { %36 = vst.msk [vmem:[%s73_s2] sm:$0xff] %vm35_vm1, %v34_v17 }

</bundles_post_ra>
